<compile_context>
chip_gen: v6e
topology: v6e:2x2x1
jax: 0.10.0
libtpu: 0.0.40
codegen_flags: <defaults>
</compile_context>

<pallas_src>
import functools
import math

import jax
import jax.numpy as jnp
from jax.experimental import pallas as pl
from jax.experimental.pallas import tpu as pltpu


def _pos_enc_kernel(emb_ref, pe_ref, out_ref, *, scale):
    # emb_ref: (TS, B, D); pe_ref: (TS, 1, D) -> broadcasts over the batch axis.
    out_ref[...] = (emb_ref[...] * scale + pe_ref[...]).astype(out_ref.dtype)
    # Dropout: nn.Dropout is identity in eval mode; eval-mode forward reproduced.
    # TODO(synk): training-mode dropout (pltpu.prng_seed + stateful_bernoulli) if needed.


def _sinusoidal_pe(seq_len, dim, dtype):
    """(seq_len, 1, dim) table identical to the module's `pe` buffer (fp32 math)."""
    position = jnp.arange(seq_len, dtype=jnp.float32)[:, None]                 # (S, 1)
    div_term = jnp.exp(jnp.arange(0, dim, 2, dtype=jnp.float32) *
                       (-math.log(10000.0) / dim))                             # (D/2,)
    angle = position * div_term                                                # (S, D/2)
    pe = jnp.stack([jnp.sin(angle), jnp.cos(angle)], axis=-1)                  # (S, D/2, 2)
    pe = pe.reshape(seq_len, dim)                                              # interleave sin/cos
    return pe[:, None, :].astype(dtype)                                        # (S, 1, D)


def _choose_seq_tile(seq_len, batch, dim, itemsize,
                     target_block_bytes=4 * 1024 * 1024):
    """Largest seq tile with ~target_block_bytes per emb block.

    ~4 MiB blocks keep the double-buffered footprint (2x in + 2x out + 2x pe)
    well under v7x's 64 MiB VMEM while being large enough (>512-row class for
    typical D) to sit near the HBM roofline.
    """
    bytes_per_row = max(1, batch * dim * itemsize)
    ts = max(1, target_block_bytes // bytes_per_row)
    ts = int(min(ts, seq_len))
    if ts >= 8:
        ts = (ts // 8) * 8  # keep tiles 8-aligned when possible
    return ts


def positional_encodings(emb: jax.Array) -> jax.Array:
    """emb: (seq_len, batch, dim). Returns emb * sqrt(dim) + PE, same shape/dtype."""
    S, B, D = emb.shape
    if D % 2 != 0:
        raise ValueError(
            f"Cannot use sin/cos positional encoding with odd dim (got dim={D})")

    pe = _sinusoidal_pe(S, D, emb.dtype)          # mirrors the module's pe buffer
    ts = _choose_seq_tile(S, B, D, emb.dtype.itemsize)
    grid = (pl.cdiv(S, ts),)

    kernel = functools.partial(_pos_enc_kernel, scale=math.sqrt(D))

    return pl.pallas_call(
        kernel,
        out_shape=jax.ShapeDtypeStruct((S, B, D), emb.dtype),
        grid=grid,
        in_specs=[
            pl.BlockSpec((ts, B, D), lambda i: (i, 0, 0)),   # emb tile
            pl.BlockSpec((ts, 1, D), lambda i: (i, 0, 0)),   # PE tile (broadcast over B)
        ],
        out_specs=pl.BlockSpec((ts, B, D), lambda i: (i, 0, 0)),
        compiler_params=pltpu.CompilerParams(
            dimension_semantics=("parallel",),       # megacore sharding on v7x
            vmem_limit_bytes=48 * 1024 * 1024,       # explicit headroom, < v7x 64 MiB
        ),
    )(emb, pe)


def _reference(emb):
    """Pure-JAX reference matching the PyTorch module (eval mode, step=None)."""
    S, B, D = emb.shape
    position = jnp.arange(S, dtype=jnp.float32)[:, None]
    div_term = jnp.exp(jnp.arange(0, D, 2, dtype=jnp.float32) *
                       (-math.log(10000.0) / D))
    pe = jnp.zeros((S, D), dtype=jnp.float32)
    pe = pe.at[:, 0::2].set(jnp.sin(position * div_term))
    pe = pe.at[:, 1::2].set(jnp.cos(position * div_term))
    pe = pe[:, None, :]
    return emb * math.sqrt(D) + pe


if __name__ == "__main__":
    seq_len, batch, dim = 8, 2, 32
    key = jax.random.PRNGKey(0)
    emb = jax.random.normal(key, (seq_len, batch, dim), dtype=jnp.float32)

    out = jax.block_until_ready(positional_encodings(emb))

    ref = _reference(emb)
    assert out.shape == (seq_len, batch, dim)
    assert out.dtype == emb.dtype
    assert jnp.allclose(out, ref, atol=1e-5, rtol=1e-5), "mismatch vs reference"

    print("KERNEL_OK")
</pallas_src>

<mosaic_0001>
module attributes {stable_mosaic.version = 11 : i64} {
  func.func @_pos_enc_kernel(%arg0: i32, %arg1: memref<8x2x32xf32, #tpu.memory_space<vmem>>, %arg2: memref<8x1x32xf32, #tpu.memory_space<vmem>>, %arg3: memref<8x2x32xf32, #tpu.memory_space<vmem>>) attributes {dimension_semantics = [#tpu.dimension_semantics<parallel>], iteration_bounds = array<i64: 1>, scalar_prefetch = 0 : i64, scratch_operands = 0 : i64, tpu.core_type = #tpu.core_type<tc>, window_params = [{transform_indices = @transform_0, window_bounds = array<i64: 8, 2, 32>}, {transform_indices = @transform_1, window_bounds = array<i64: 8, 1, 32>}, {transform_indices = @transform_2, window_bounds = array<i64: 8, 2, 32>}]} {
    %c0 = arith.constant 0 : index
    %c0_0 = arith.constant 0 : index
    %c0_1 = arith.constant 0 : index
    %0 = vector.load %arg1[%c0, %c0_0, %c0_1] : memref<8x2x32xf32, #tpu.memory_space<vmem>>, vector<8x2x32xf32>
    %cst = arith.constant 5.65685415 : f32
    %1 = vector.broadcast %cst : f32 to vector<8x2x32xf32>
    %2 = arith.mulf %0, %1 : vector<8x2x32xf32>
    %c0_2 = arith.constant 0 : index
    %c0_3 = arith.constant 0 : index
    %c0_4 = arith.constant 0 : index
    %3 = vector.load %arg2[%c0_2, %c0_3, %c0_4] : memref<8x1x32xf32, #tpu.memory_space<vmem>>, vector<8x1x32xf32>
    %4 = vector.broadcast %3 : vector<8x1x32xf32> to vector<8x2x32xf32>
    %5 = arith.addf %2, %4 : vector<8x2x32xf32>
    %c0_5 = arith.constant 0 : index
    %c0_6 = arith.constant 0 : index
    %c0_7 = arith.constant 0 : index
    %6 = vector.load %arg3[%c0_5, %c0_6, %c0_7] : memref<8x2x32xf32, #tpu.memory_space<vmem>>, vector<8x2x32xf32>
    tpu.vector_store %arg3[%c0_5, %c0_6, %c0_7], %5 {strides = array<i32>} : memref<8x2x32xf32, #tpu.memory_space<vmem>>, vector<8x2x32xf32>,
    return
  }
  func.func @transform_0(%arg0: i32) -> (i32, i32, i32) {
    %c0_i32 = arith.constant 0 : i32
    %c0_i32_0 = arith.constant 0 : i32
    %c0_i32_1 = arith.constant 0 : i32
    return %arg0, %c0_i32, %c0_i32_0 : i32, i32, i32
  }
  func.func @transform_1(%arg0: i32) -> (i32, i32, i32) {
    %c0_i32 = arith.constant 0 : i32
    %c0_i32_0 = arith.constant 0 : i32
    %c0_i32_1 = arith.constant 0 : i32
    return %arg0, %c0_i32, %c0_i32_0 : i32, i32, i32
  }
  func.func @transform_2(%arg0: i32) -> (i32, i32, i32) {
    %c0_i32 = arith.constant 0 : i32
    %c0_i32_0 = arith.constant 0 : i32
    %c0_i32_1 = arith.constant 0 : i32
    return %arg0, %c0_i32, %c0_i32_0 : i32, i32, i32
  }
}

</mosaic_0001>

<bundles_post_ra>
// kernel: tpu_custom_call.1
= control target key start
LH: loop header
LB: loop body
LE: loop exit
PB: predicated region body
PF: predicated region fallthrough
CT: control target
= control target key end

     0   :  { %7 = vsyncpa [#allocation3], 0  ;;  %s276_s0 = inlined_call_operand.hbm [shape: f32[8,2,32], index: 0, kind: input, shape index: {}]   ;;  %s277_s1 = inlined_call_operand.hbm [shape: f32[8,1,32], index: 1, kind: input, shape index: {}]   ;;  %s278_s2 = inlined_call_operand.hbm [shape: f32[8,2,32], index: 2, kind: output, shape index: {}]  }
   0x1   :  { %8 = vsyncpa [#allocation6], 0 }
   0x2   :  { %9 = vsyncpa [#allocation4], 0  ;;  %s228_s9 = smov [#allocation2]  }
   0x3   :  { %s15_s10 = sshll.u32 %s228_s9, 4  ;;  %s16_s10 = int_to_ptr.vmem [resolvable:$true] %s15_s10 }
   0x4   :  { %s170_s11 = scalar_lea.vmem %s16_s10, 256  ;;  %p175_p1 = scmp.lt.s32.totalorder %s16_s10, %s16_s10 }
   0x5   :  { %p171_p0 = scmp.ne.s32.totalorder %s16_s10, %s170_s11  ;;  %p176_p2 = scmp.lt.s32.totalorder %s170_s11, %s170_s11 }
   0x7   :  { %p177_p3 = por %p176_p2, %p175_p1 }
   0x9   :  { %p178_p4 = pnand %p177_p3, %p171_p0 }
   0xb   :  { %181 = shalt.err (!%p178_p4)
}
   0xc   :  { %s229_s12 = smov 32   ;;  %s230_s13 = smov 2  }
   0xd   :  { %21 = dma.hbm_to_vmem [thread:$0]  %s276_s0, 256, %s16_s10, [#allocation3], %s229_s12, %s229_s12, %s230_s13  }
   0xe   :  { %s231_s16 = smov [#allocation5]  }
   0xf   :  { %s27_s17 = sshll.u32 %s231_s16, 4  ;;  %s28_s17 = int_to_ptr.vmem [resolvable:$true] %s27_s17 }
  0x10   :  { %s190_s18 = scalar_lea.vmem %s28_s17, 128  ;;  %p195_p6 = scmp.lt.s32.totalorder %s28_s17, %s28_s17 }
  0x11   :  { %p191_p5 = scmp.ne.s32.totalorder %s28_s17, %s190_s18  ;;  %p196_p7 = scmp.lt.s32.totalorder %s190_s18, %s190_s18 }
  0x13   :  { %p197_p8 = por %p196_p7, %p195_p6 }
  0x15   :  { %p198_p9 = pnand %p197_p8, %p191_p5 }
  0x17   :  { %201 = shalt.err (!%p198_p9)
}
  0x18   :  { %s232_s19 = smov 16   ;;  %s233_s20 = smov 1  }
  0x19   :  { %33 = dma.hbm_to_vmem [thread:$0]  %s277_s1, 128, %s28_s17, [#allocation6], %s232_s19, %s232_s19, %s233_s20  }
  0x1a   :  { %222 = dma.done.wait [#allocation3], 256  }
  0x1b   :  { %223 = vsyncadd [#allocation3], 4294967040 }
  0x1c   :  { %224 = dma.done.wait [#allocation6], 128  }
  0x1d   :  { %225 = vsyncadd [#allocation6], 4294967168  ;;  %vm120_vm0 = vcmask 254976   ;;  %s234_s0 = smov [#allocation7]   ;;  %v40_v0 = vld [vmem:[#allocation2] sm:$0x3] }
  0x1e   :  { %s259_s23 = sshll.u32 %s234_s0, 4  ;;  %v147_v1 = vld [vmem:[#allocation5] ss:$0 sm:$0xff]  ;;  %v41_v2 = vld [vmem:[#allocation2 + $0x2] sm:$0x3]  ;;  %s135_s23 = int_to_ptr.vmem [resolvable:$true] %s259_s23 }
  0x1f   :  { %v48_v3 = vmul.f32 5.656854, %v40_v0  ;;  %v49_v4 = vmul.f32 5.656854, %v41_v2  ;;  %v148_v5 = vld [vmem:[#allocation5 + $0x1] ss:$0 sm:$0xff]  ;;  %p207_p11 = scmp.lt.s32.totalorder %s135_s23, %s135_s23 }
  0x20   :  { %v42_v6 = vld [vmem:[#allocation2 + $0x4] sm:$0x3]  ;;  %v149_v7 = vld [vmem:[#allocation5 + $0x2] ss:$0 sm:$0xff]  ;;  %v43_v8 = vld [vmem:[#allocation2 + $0x6] sm:$0x3] }
  0x21   :  { %v112_v9 = vadd.f32 %v147_v1, %v48_v3  ;;  %v113_v10 = vadd.f32 %v148_v5, %v49_v4  ;;  %v50_v11 = vmul.f32 5.656854, %v42_v6  ;;  %v51_v12 = vmul.f32 5.656854, %v43_v8  ;;  %v150_v13 = vld [vmem:[#allocation5 + $0x3] ss:$0 sm:$0xff] }
  0x22   :  { %v44_v14 = vld [vmem:[#allocation2 + $0x8] sm:$0x3]  ;;  %v151_v15 = vld [vmem:[#allocation5 + $0x4] ss:$0 sm:$0xff]  ;;  %v45_v16 = vld [vmem:[#allocation2 + $0xa] sm:$0x3] }
  0x23   :  { %121 = vst.msk [vmem:[#allocation7] sm:$0x3] %vm120_vm0, %v112_v9  ;;  %122 = vst.msk [vmem:[#allocation7 + $0x2] sm:$0x3] %vm120_vm0, %v113_v10  ;;  %v114_v17 = vadd.f32 %v149_v7, %v50_v11  ;;  %v115_v18 = vadd.f32 %v150_v13, %v51_v12  ;;  %v52_v19 = vmul.f32 5.656854, %v44_v14 }
  0x24   :  { %v53_v20 = vmul.f32 5.656854, %v45_v16  ;;  %v152_v21 = vld [vmem:[#allocation5 + $0x5] ss:$0 sm:$0xff]  ;;  %v46_v22 = vld [vmem:[#allocation2 + $0xc] sm:$0x3] }
  0x25   :  { %v153_v23 = vld [vmem:[#allocation5 + $0x6] ss:$0 sm:$0xff]  ;;  %v47_v24 = vld [vmem:[#allocation2 + $0xe] sm:$0x3]  ;;  %123 = vst.msk [vmem:[#allocation7 + $0x4] sm:$0x3] %vm120_vm0, %v114_v17  ;;  %v116_v25 = vadd.f32 %v151_v15, %v52_v19 }
  0x26   :  { %124 = vst.msk [vmem:[#allocation7 + $0x6] sm:$0x3] %vm120_vm0, %v115_v18  ;;  %v117_v26 = vadd.f32 %v152_v21, %v53_v20  ;;  %v54_v27 = vmul.f32 5.656854, %v46_v22  ;;  %v55_v28 = vmul.f32 5.656854, %v47_v24 }
  0x27   :  { %v154_v29 = vld [vmem:[#allocation5 + $0x7] ss:$0 sm:$0xff]  ;;  %125 = vst.msk [vmem:[#allocation7 + $0x8] sm:$0x3] %vm120_vm0, %v116_v25  ;;  %s202_s1 = scalar_lea.vmem %s135_s23, 256 }
  0x28   :  { %126 = vst.msk [vmem:[#allocation7 + $0xa] sm:$0x3] %vm120_vm0, %v117_v26  ;;  %v118_v30 = vadd.f32 %v153_v23, %v54_v27  ;;  %v119_v31 = vadd.f32 %v154_v29, %v55_v28  ;;  %p203_p10 = scmp.ne.s32.totalorder %s135_s23, %s202_s1  ;;  %p208_p12 = scmp.lt.s32.totalorder %s202_s1, %s202_s1 }
  0x2a   :  { %127 = vst.msk [vmem:[#allocation7 + $0xc] sm:$0x3] %vm120_vm0, %v118_v30  ;;  %128 = vst.msk [vmem:[#allocation7 + $0xe] sm:$0x3] %vm120_vm0, %v119_v31  ;;  %p209_p13 = por %p208_p12, %p207_p11 }
  0x2c   :  { %p210_p0 = pnand %p209_p13, %p203_p10 }
  0x2e   :  { %213 = shalt.err (!%p210_p0)
}
  0x2f   :  { %140 = dma.vmem_to_hbm [thread:$0]  %s135_s23, 256, %s278_s2, [#allocation4], %s229_s12, %s229_s12, %s230_s13  }
  0x30   :  { %226 = dma.done.wait [#allocation4], 256  }
  0x31   :  { %227 = vsyncadd [#allocation4], 4294967040 }
  0x32   :  { %144 = vsyncpa [#allocation3], 1 }
  0x33   :  { %145 = vsyncpa [#allocation6], 1 }
  0x34   :  { %146 = vsyncpa [#allocation4], 1 }

</bundles_post_ra>
